<compile_context>
chip_gen: v7x
topology: tpu7x:2x2x1
jax: 0.10.0
libtpu: 0.0.40
codegen_flags: <defaults>
</compile_context>

<pallas_src>
import functools

import jax
import jax.numpy as jnp
from jax.experimental import pallas as pl
from jax.experimental.pallas import tpu as pltpu

N_STEPS = 10   # GRU input_size (x.view(B, 1, -1) -> 10 features, seq_len == 1)
HIDDEN = 100   # GRU hidden_size
HP = 128       # per-gate hidden width, padded to one 128-lane vreg tile


# ---------------------------------------------------------------------------
# Kernel
# ---------------------------------------------------------------------------
def gru_linear_kernel(x_ref,
                      w0_ref, bc0_ref, bhn0_ref,
                      w1_ref, bc1_ref, bhn1_ref,
                      wlin_ref, blin_ref,
                      out_ref, *, gate_dtype):
    """One batch tile: GRU layer0 -> GRU layer1 -> Linear (batch-on-lanes out).

    Relies on seq_len == 1 and h0 == 0 (exactly what Lstm.forward does):
      gh = h @ W_hh + b_hh == b_hh   -> both hidden-state matmuls eliminated,
                                        b_ih + b_hh folded wrapper-side for r/z
      h' = (1 - z) * n + z * h == (1 - z) * n
    Gate order [r | z | n] (torch.nn.GRU); each gate owns a 128-lane slab, so
    the slices below are free vreg selections.
    """

    def sigmoid(v):
        # tanh-form sigmoid: a single EUP push instead of exp + divide.
        return 0.5 * jnp.tanh(0.5 * v) + 0.5

    def cell(x_bf16, w_ref, bc_ref, bhn_ref):
        # MXU matmul + bias add accumulate in f32; gate math in gate_dtype
        # (bf16 on v6e/v7x halves vreg/VALU/EUP pressure; f32 on v5e).
        gi = (jnp.dot(x_bf16, w_ref[...], preferred_element_type=jnp.float32)
              + bc_ref[...]).astype(gate_dtype)
        r = sigmoid(gi[:, 0 * HP:1 * HP])
        z = sigmoid(gi[:, 1 * HP:2 * HP])
        n = jnp.tanh(gi[:, 2 * HP:3 * HP] + r * bhn_ref[...].astype(gate_dtype))
        return (1.0 - z) * n                         # + z*h, but h == 0

    h1 = cell(x_ref[...].astype(jnp.bfloat16), w0_ref, bc0_ref, bhn0_ref)
    # TODO(synk): nn.GRU dropout(p=0.1) between layers is train-only; inference forward used.
    h2 = cell(h1.astype(jnp.bfloat16), w1_ref, bc1_ref, bhn1_ref)

    # Batch-on-lanes final Linear: contract the hidden dim of (1,HP) and (tb,HP)
    # -> (1, tb).  Output HBM writeback is 4 B per batch element.
    y = jax.lax.dot_general(wlin_ref[...], h2.astype(jnp.bfloat16),
                            dimension_numbers=(((1,), (1,)), ((), ())),
                            preferred_element_type=jnp.float32)
    out_ref[...] = (y + blin_ref[...]).astype(out_ref.dtype)


# ---------------------------------------------------------------------------
# Generation-aware wrapper choices
# ---------------------------------------------------------------------------
def _device_kind():
    try:
        return jax.devices()[0].device_kind.lower()
    except Exception:
        return ""


def _gate_dtype(kind):
    # bf16 VALU/EUP exists on v6e / v7x; v5e and older do f32 gate math.
    if any(tag in kind for tag in ("v6", "v7", "6e", "7x")):
        return jnp.bfloat16
    return jnp.float32


def _pick_tb(B, kind):
    """Batch tile. Lane-dense output blocks need tb % 128 == 0 unless tb == B."""
    is_v7 = ("v7" in kind) or ("7x" in kind)
    is_pre_v6 = any(tag in kind for tag in ("v2", "v3", "v4", "v5"))
    cap = 128 if is_pre_v6 else 256      # v5e: 1 vst slot + f32 gates -> smaller tile
    cands = [t for t in (256, 128) if t <= cap and B % t == 0]
    if is_v7:
        for t in cands:                   # even #steps -> both TensorCores loaded
            if (B // t) % 2 == 0:
                return t
    if cands:
        return cands[0]                   # single-TC: largest tile, fewest grid steps
    return B                              # small/irregular batch: one full-array tile


def lstm_forward(x, packed, *, tb=None):
    """x: (B, n_steps) f32 -> (B, 1, 1) f32 (matches Lstm.forward)."""
    B = x.shape[0]
    kind = _device_kind()
    if tb is None:
        tb = _pick_tb(B, kind)
    assert B % tb == 0, "batch must be a multiple of the batch tile"

    rep = lambda i: (0, 0)   # weights replicated across batch tiles
    weight_specs = [pl.BlockSpec(p.shape, rep) for p in packed]

    kernel = functools.partial(gru_linear_kernel, gate_dtype=_gate_dtype(kind))

    out = pl.pallas_call(
        kernel,
        out_shape=jax.ShapeDtypeStruct((1, B), jnp.float32),
        grid_spec=pltpu.PrefetchScalarGridSpec(
            num_scalar_prefetch=0,
            grid=(B // tb,),
            in_specs=[pl.BlockSpec((tb, N_STEPS), lambda i: (i, 0))] + weight_specs,
            out_specs=pl.BlockSpec((1, tb), lambda i: (0, i)),
        ),
        compiler_params=pltpu.CompilerParams(
            dimension_semantics=("parallel",)),
    )(x, *packed)

    # (1, B) batch-on-lanes -> (B, 1, 1); no padded-lane slice / extra HBM pass.
    return out.reshape(B, 1, 1)


# ---------------------------------------------------------------------------
# Parameters (PyTorch layout) and MXU-friendly repack
# ---------------------------------------------------------------------------
def init_params(key):
    """PyTorch-layout GRU/Linear params, U(-1/sqrt(H), 1/sqrt(H)) like torch."""
    bound = 1.0 / (HIDDEN ** 0.5)
    ks = jax.random.split(key, 10)
    u = lambda k, s: jax.random.uniform(k, s, jnp.float32, -bound, bound)
    return dict(
        w_ih_l0=u(ks[0], (3 * HIDDEN, N_STEPS)),
        w_hh_l0=u(ks[1], (3 * HIDDEN, HIDDEN)),
        b_ih_l0=u(ks[2], (3 * HIDDEN,)),
        b_hh_l0=u(ks[3], (3 * HIDDEN,)),
        w_ih_l1=u(ks[4], (3 * HIDDEN, HIDDEN)),
        w_hh_l1=u(ks[5], (3 * HIDDEN, HIDDEN)),
        b_ih_l1=u(ks[6], (3 * HIDDEN,)),
        b_hh_l1=u(ks[7], (3 * HIDDEN,)),
        w_lin=u(ks[8], (1, HIDDEN)),
        b_lin=u(ks[9], (1,)),
    )


def _pack_layer(w_ih, b_ih, b_hh, in_pad):
    """PyTorch GRU layer -> (w bf16 (in_pad, 3*HP), bc f32 (1,3*HP), bhn f32 (1,HP)).

    Each gate [r|z|n] goes into its own 128-lane slab; padded lanes/rows are 0
    (sigmoid(0)*tanh(0) keeps padded hidden lanes exactly 0 through both layers).
    b_ih + b_hh is folded for r/z (valid because h0 == 0); b_hh_n kept separate.
    """
    H = HIDDEN
    in_dim = w_ih.shape[1]
    w_t = w_ih.T.astype(jnp.float32)                      # (in_dim, 3H)
    w = jnp.zeros((in_pad, 3 * HP), jnp.float32)
    bc = jnp.zeros((1, 3 * HP), jnp.float32)
    for g in range(3):
        w = w.at[:in_dim, g * HP:g * HP + H].set(w_t[:, g * H:(g + 1) * H])
        bias = b_ih[g * H:(g + 1) * H]
        if g < 2:                                         # r, z gates
            bias = bias + b_hh[g * H:(g + 1) * H]
        bc = bc.at[0, g * HP:g * HP + H].set(bias)
    bhn = jnp.zeros((1, HP), jnp.float32).at[0, :H].set(b_hh[2 * H:3 * H])
    return w.astype(jnp.bfloat16), bc, bhn


def repack_params(p):
    """One-time wrapper-side repack into the kernel's padded bf16/f32 layout."""
    w0, bc0, bhn0 = _pack_layer(p["w_ih_l0"], p["b_ih_l0"], p["b_hh_l0"], N_STEPS)
    w1, bc1, bhn1 = _pack_layer(p["w_ih_l1"], p["b_ih_l1"], p["b_hh_l1"], HP)
    wlin = (jnp.zeros((1, HP), jnp.float32)
            .at[0, :HIDDEN].set(p["w_lin"][0, :])).astype(jnp.bfloat16)
    blin = p["b_lin"].reshape(1, 1).astype(jnp.float32)
    return (w0, bc0, bhn0, w1, bc1, bhn1, wlin, blin)


# ---------------------------------------------------------------------------
# Pure-JAX reference (full torch.nn.GRU equations, PyTorch weight layout,
# including the hidden-state matmuls -- validates the kernel's elimination
# and repacking, not just its own equations).
# ---------------------------------------------------------------------------
def reference(x, p):
    B, H = x.shape[0], HIDDEN

    def gru_cell(xx, hh, w_ih, w_hh, b_ih, b_hh):
        gi = xx @ w_ih.T + b_ih
        gh = hh @ w_hh.T + b_hh
        r = jax.nn.sigmoid(gi[:, :H] + gh[:, :H])
        z = jax.nn.sigmoid(gi[:, H:2 * H] + gh[:, H:2 * H])
        n = jnp.tanh(gi[:, 2 * H:] + r * gh[:, 2 * H:])
        return (1.0 - z) * n + z * hh

    h0 = jnp.zeros((B, H), jnp.float32)
    h1 = gru_cell(x, h0, p["w_ih_l0"], p["w_hh_l0"], p["b_ih_l0"], p["b_hh_l0"])
    # dropout(p=0.1) between layers is train-only -> identity at inference.
    h2 = gru_cell(h1, h0, p["w_ih_l1"], p["w_hh_l1"], p["b_ih_l1"], p["b_hh_l1"])
    y = h2 @ p["w_lin"].T + p["b_lin"]
    return y.reshape(B, 1, 1)


if __name__ == "__main__":
    key = jax.random.PRNGKey(0)
    kx, kp = jax.random.split(key)

    B = 32
    x = jax.random.normal(kx, (B, N_STEPS), jnp.float32)
    params = init_params(kp)
    packed = repack_params(params)

    out = jax.block_until_ready(lstm_forward(x, packed))
    ref = reference(x, params)

    assert out.shape == (B, 1, 1), out.shape
    # bf16 MXU operands (+ bf16 gate math on v6e/v7x) vs f32 reference.
    err = float(jnp.max(jnp.abs(out - ref)))
    assert jnp.allclose(out, ref, atol=3e-2, rtol=3e-2), f"max |err| = {err}"

    print("KERNEL_OK")
</pallas_src>

<mosaic_0001>
module attributes {stable_mosaic.version = 11 : i64} {
  func.func @gru_linear_kernel(%arg0: i32, %arg1: memref<32x10xf32, #tpu.memory_space<vmem>>, %arg2: memref<10x384xbf16, #tpu.memory_space<vmem>>, %arg3: memref<1x384xf32, #tpu.memory_space<vmem>>, %arg4: memref<1x128xf32, #tpu.memory_space<vmem>>, %arg5: memref<128x384xbf16, #tpu.memory_space<vmem>>, %arg6: memref<1x384xf32, #tpu.memory_space<vmem>>, %arg7: memref<1x128xf32, #tpu.memory_space<vmem>>, %arg8: memref<1x128xbf16, #tpu.memory_space<vmem>>, %arg9: memref<1x1xf32, #tpu.memory_space<vmem>>, %arg10: memref<1x32xf32, #tpu.memory_space<vmem>>) attributes {dimension_semantics = [#tpu.dimension_semantics<parallel>], iteration_bounds = array<i64: 1>, scalar_prefetch = 0 : i64, scratch_operands = 0 : i64, tpu.core_type = #tpu.core_type<tc>, window_params = [{transform_indices = @transform_0, window_bounds = array<i64: 32, 10>}, {pipeline_mode = #tpu.pipeline_mode<synchronous>, transform_indices = @transform_1, window_bounds = array<i64: 10, 384>}, {pipeline_mode = #tpu.pipeline_mode<synchronous>, transform_indices = @transform_2, window_bounds = array<i64: 1, 384>}, {pipeline_mode = #tpu.pipeline_mode<synchronous>, transform_indices = @transform_3, window_bounds = array<i64: 1, 128>}, {pipeline_mode = #tpu.pipeline_mode<synchronous>, transform_indices = @transform_4, window_bounds = array<i64: 128, 384>}, {pipeline_mode = #tpu.pipeline_mode<synchronous>, transform_indices = @transform_5, window_bounds = array<i64: 1, 384>}, {pipeline_mode = #tpu.pipeline_mode<synchronous>, transform_indices = @transform_6, window_bounds = array<i64: 1, 128>}, {pipeline_mode = #tpu.pipeline_mode<synchronous>, transform_indices = @transform_7, window_bounds = array<i64: 1, 128>}, {pipeline_mode = #tpu.pipeline_mode<synchronous>, transform_indices = @transform_8, window_bounds = array<i64: 1, 1>}, {transform_indices = @transform_9, window_bounds = array<i64: 1, 32>}]} {
    %c0 = arith.constant 0 : index
    %c0_0 = arith.constant 0 : index
    %0 = vector.load %arg1[%c0, %c0_0] : memref<32x10xf32, #tpu.memory_space<vmem>>, vector<32x10xf32>
    %1 = arith.truncf %0 : vector<32x10xf32> to vector<32x10xbf16>
    %c0_1 = arith.constant 0 : index
    %c0_2 = arith.constant 0 : index
    %2 = vector.load %arg2[%c0_1, %c0_2] : memref<10x384xbf16, #tpu.memory_space<vmem>>, vector<10x384xbf16>
    %cst = arith.constant dense<0.000000e+00> : vector<32x384xf32>
    %3 = tpu.matmul %1, %2, %cst {dimension_numbers = #tpu.dot_dimension_numbers<[1], [0], [0], [1], [0, 0, 1, 1], [], []>} : vector<32x10xbf16>, vector<10x384xbf16>, vector<32x384xf32> -> vector<32x384xf32>
    %c0_3 = arith.constant 0 : index
    %c0_4 = arith.constant 0 : index
    %4 = vector.load %arg3[%c0_3, %c0_4] : memref<1x384xf32, #tpu.memory_space<vmem>>, vector<1x384xf32>
    %5 = vector.broadcast %4 : vector<1x384xf32> to vector<32x384xf32>
    %6 = arith.addf %3, %5 : vector<32x384xf32>
    %7 = vector.extract_strided_slice %6 {offsets = [0, 0], sizes = [32, 128], strides = [1, 1]} : vector<32x384xf32> to vector<32x128xf32>
    %cst_5 = arith.constant 5.000000e-01 : f32
    %8 = vector.broadcast %cst_5 : f32 to vector<32x128xf32>
    %9 = arith.mulf %8, %7 : vector<32x128xf32>
    %10 = math.tanh %9 : vector<32x128xf32>
    %cst_6 = arith.constant 5.000000e-01 : f32
    %11 = vector.broadcast %cst_6 : f32 to vector<32x128xf32>
    %12 = arith.mulf %11, %10 : vector<32x128xf32>
    %cst_7 = arith.constant 5.000000e-01 : f32
    %13 = vector.broadcast %cst_7 : f32 to vector<32x128xf32>
    %14 = arith.addf %12, %13 : vector<32x128xf32>
    %15 = vector.extract_strided_slice %6 {offsets = [0, 128], sizes = [32, 128], strides = [1, 1]} : vector<32x384xf32> to vector<32x128xf32>
    %cst_8 = arith.constant 5.000000e-01 : f32
    %16 = vector.broadcast %cst_8 : f32 to vector<32x128xf32>
    %17 = arith.mulf %16, %15 : vector<32x128xf32>
    %18 = math.tanh %17 : vector<32x128xf32>
    %cst_9 = arith.constant 5.000000e-01 : f32
    %19 = vector.broadcast %cst_9 : f32 to vector<32x128xf32>
    %20 = arith.mulf %19, %18 : vector<32x128xf32>
    %cst_10 = arith.constant 5.000000e-01 : f32
    %21 = vector.broadcast %cst_10 : f32 to vector<32x128xf32>
    %22 = arith.addf %20, %21 : vector<32x128xf32>
    %23 = vector.extract_strided_slice %6 {offsets = [0, 256], sizes = [32, 128], strides = [1, 1]} : vector<32x384xf32> to vector<32x128xf32>
    %c0_11 = arith.constant 0 : index
    %c0_12 = arith.constant 0 : index
    %24 = vector.load %arg4[%c0_11, %c0_12] : memref<1x128xf32, #tpu.memory_space<vmem>>, vector<1x128xf32>
    %25 = vector.broadcast %24 : vector<1x128xf32> to vector<32x128xf32>
    %26 = arith.mulf %14, %25 : vector<32x128xf32>
    %27 = arith.addf %23, %26 : vector<32x128xf32>
    %28 = math.tanh %27 : vector<32x128xf32>
    %cst_13 = arith.constant 1.000000e+00 : f32
    %29 = vector.broadcast %cst_13 : f32 to vector<32x128xf32>
    %30 = arith.subf %29, %22 : vector<32x128xf32>
    %31 = arith.mulf %30, %28 : vector<32x128xf32>
    %32 = arith.truncf %31 : vector<32x128xf32> to vector<32x128xbf16>
    %c0_14 = arith.constant 0 : index
    %c0_15 = arith.constant 0 : index
    %33 = vector.load %arg5[%c0_14, %c0_15] : memref<128x384xbf16, #tpu.memory_space<vmem>>, vector<128x384xbf16>
    %cst_16 = arith.constant dense<0.000000e+00> : vector<32x384xf32>
    %34 = tpu.matmul %32, %33, %cst_16 {dimension_numbers = #tpu.dot_dimension_numbers<[1], [0], [0], [1], [0, 0, 1, 1], [], []>} : vector<32x128xbf16>, vector<128x384xbf16>, vector<32x384xf32> -> vector<32x384xf32>
    %c0_17 = arith.constant 0 : index
    %c0_18 = arith.constant 0 : index
    %35 = vector.load %arg6[%c0_17, %c0_18] : memref<1x384xf32, #tpu.memory_space<vmem>>, vector<1x384xf32>
    %36 = vector.broadcast %35 : vector<1x384xf32> to vector<32x384xf32>
    %37 = arith.addf %34, %36 : vector<32x384xf32>
    %38 = vector.extract_strided_slice %37 {offsets = [0, 0], sizes = [32, 128], strides = [1, 1]} : vector<32x384xf32> to vector<32x128xf32>
    %cst_19 = arith.constant 5.000000e-01 : f32
    %39 = vector.broadcast %cst_19 : f32 to vector<32x128xf32>
    %40 = arith.mulf %39, %38 : vector<32x128xf32>
    %41 = math.tanh %40 : vector<32x128xf32>
    %cst_20 = arith.constant 5.000000e-01 : f32
    %42 = vector.broadcast %cst_20 : f32 to vector<32x128xf32>
    %43 = arith.mulf %42, %41 : vector<32x128xf32>
    %cst_21 = arith.constant 5.000000e-01 : f32
    %44 = vector.broadcast %cst_21 : f32 to vector<32x128xf32>
    %45 = arith.addf %43, %44 : vector<32x128xf32>
    %46 = vector.extract_strided_slice %37 {offsets = [0, 128], sizes = [32, 128], strides = [1, 1]} : vector<32x384xf32> to vector<32x128xf32>
    %cst_22 = arith.constant 5.000000e-01 : f32
    %47 = vector.broadcast %cst_22 : f32 to vector<32x128xf32>
    %48 = arith.mulf %47, %46 : vector<32x128xf32>
    %49 = math.tanh %48 : vector<32x128xf32>
    %cst_23 = arith.constant 5.000000e-01 : f32
    %50 = vector.broadcast %cst_23 : f32 to vector<32x128xf32>
    %51 = arith.mulf %50, %49 : vector<32x128xf32>
    %cst_24 = arith.constant 5.000000e-01 : f32
    %52 = vector.broadcast %cst_24 : f32 to vector<32x128xf32>
    %53 = arith.addf %51, %52 : vector<32x128xf32>
    %54 = vector.extract_strided_slice %37 {offsets = [0, 256], sizes = [32, 128], strides = [1, 1]} : vector<32x384xf32> to vector<32x128xf32>
    %c0_25 = arith.constant 0 : index
    %c0_26 = arith.constant 0 : index
    %55 = vector.load %arg7[%c0_25, %c0_26] : memref<1x128xf32, #tpu.memory_space<vmem>>, vector<1x128xf32>
    %56 = vector.broadcast %55 : vector<1x128xf32> to vector<32x128xf32>
    %57 = arith.mulf %45, %56 : vector<32x128xf32>
    %58 = arith.addf %54, %57 : vector<32x128xf32>
    %59 = math.tanh %58 : vector<32x128xf32>
    %cst_27 = arith.constant 1.000000e+00 : f32
    %60 = vector.broadcast %cst_27 : f32 to vector<32x128xf32>
    %61 = arith.subf %60, %53 : vector<32x128xf32>
    %62 = arith.mulf %61, %59 : vector<32x128xf32>
    %c0_28 = arith.constant 0 : index
    %c0_29 = arith.constant 0 : index
    %63 = vector.load %arg8[%c0_28, %c0_29] : memref<1x128xbf16, #tpu.memory_space<vmem>>, vector<1x128xbf16>
    %64 = arith.truncf %62 : vector<32x128xf32> to vector<32x128xbf16>
    %cst_30 = arith.constant dense<0.000000e+00> : vector<1x32xf32>
    %65 = tpu.matmul %63, %64, %cst_30 {dimension_numbers = #tpu.dot_dimension_numbers<[1], [1], [0], [0], [0, 0, 1, 0], [], []>} : vector<1x128xbf16>, vector<32x128xbf16>, vector<1x32xf32> -> vector<1x32xf32>
    %c0_31 = arith.constant 0 : index
    %c0_32 = arith.constant 0 : index
    %66 = vector.load %arg9[%c0_31, %c0_32] : memref<1x1xf32, #tpu.memory_space<vmem>>, vector<1x1xf32>
    %67 = vector.broadcast %66 : vector<1x1xf32> to vector<1x32xf32>
    %68 = arith.addf %65, %67 : vector<1x32xf32>
    %c0_33 = arith.constant 0 : index
    %c0_34 = arith.constant 0 : index
    %69 = vector.load %arg10[%c0_33, %c0_34] : memref<1x32xf32, #tpu.memory_space<vmem>>, vector<1x32xf32>
    tpu.vector_store %arg10[%c0_33, %c0_34], %68 {strides = array<i32>} : memref<1x32xf32, #tpu.memory_space<vmem>>, vector<1x32xf32>,
    return
  }
  func.func @transform_0(%arg0: i32) -> (i32, i32) {
    %c0_i32 = arith.constant 0 : i32
    %c0_i32_0 = arith.constant 0 : i32
    return %arg0, %c0_i32 : i32, i32
  }
  func.func @transform_1(%arg0: i32) -> (i32, i32) {
    %c0_i32 = arith.constant 0 : i32
    %c0_i32_0 = arith.constant 0 : i32
    %c0_i32_1 = arith.constant 0 : i32
    return %c0_i32, %c0_i32_0 : i32, i32
  }
  func.func @transform_2(%arg0: i32) -> (i32, i32) {
    %c0_i32 = arith.constant 0 : i32
    %c0_i32_0 = arith.constant 0 : i32
    %c0_i32_1 = arith.constant 0 : i32
    return %c0_i32, %c0_i32_0 : i32, i32
  }
  func.func @transform_3(%arg0: i32) -> (i32, i32) {
    %c0_i32 = arith.constant 0 : i32
    %c0_i32_0 = arith.constant 0 : i32
    %c0_i32_1 = arith.constant 0 : i32
    return %c0_i32, %c0_i32_0 : i32, i32
  }
  func.func @transform_4(%arg0: i32) -> (i32, i32) {
    %c0_i32 = arith.constant 0 : i32
    %c0_i32_0 = arith.constant 0 : i32
    %c0_i32_1 = arith.constant 0 : i32
    return %c0_i32, %c0_i32_0 : i32, i32
  }
  func.func @transform_5(%arg0: i32) -> (i32, i32) {
    %c0_i32 = arith.constant 0 : i32
    %c0_i32_0 = arith.constant 0 : i32
    %c0_i32_1 = arith.constant 0 : i32
    return %c0_i32, %c0_i32_0 : i32, i32
  }
  func.func @transform_6(%arg0: i32) -> (i32, i32) {
    %c0_i32 = arith.constant 0 : i32
    %c0_i32_0 = arith.constant 0 : i32
    %c0_i32_1 = arith.constant 0 : i32
    return %c0_i32, %c0_i32_0 : i32, i32
  }
  func.func @transform_7(%arg0: i32) -> (i32, i32) {
    %c0_i32 = arith.constant 0 : i32
    %c0_i32_0 = arith.constant 0 : i32
    %c0_i32_1 = arith.constant 0 : i32
    return %c0_i32, %c0_i32_0 : i32, i32
  }
  func.func @transform_8(%arg0: i32) -> (i32, i32) {
    %c0_i32 = arith.constant 0 : i32
    %c0_i32_0 = arith.constant 0 : i32
    %c0_i32_1 = arith.constant 0 : i32
    return %c0_i32, %c0_i32_0 : i32, i32
  }
  func.func @transform_9(%arg0: i32) -> (i32, i32) {
    %c0_i32 = arith.constant 0 : i32
    %c0_i32_0 = arith.constant 0 : i32
    return %c0_i32, %arg0 : i32, i32
  }
}

</mosaic_0001>

<bundles_post_ra>
// kernel: tpu_custom_call.1
= control target key start
LH: loop header
LB: loop body
LE: loop exit
PB: predicated region body
PF: predicated region fallthrough
CT: control target
= control target key end

     0   :  { %s1049_s0 = inlined_call_operand.vmem [shape: f32[32,10], index: 0, kind: input, shape index: {}]   ;;  %s1050_s1 = inlined_call_operand.vmem [shape: bf16[10,384], index: 1, kind: input, shape index: {}]   ;;  %s1051_s2 = inlined_call_operand.vmem [shape: f32[1,384], index: 2, kind: input, shape index: {}]   ;;  %s1052_s3 = inlined_call_operand.vmem [shape: f32[1,128], index: 3, kind: input, shape index: {}]   ;;  %s1053_s4 = inlined_call_operand.hbm [shape: bf16[128,384], index: 4, kind: input, shape index: {}]   ;;  %s1054_s5 = inlined_call_operand.vmem [shape: f32[1,384], index: 5, kind: input, shape index: {}]   ;;  %s1055_s6 = inlined_call_operand.vmem [shape: f32[1,128], index: 6, kind: input, shape index: {}]   ;;  %s1056_s7 = inlined_call_operand.vmem [shape: bf16[1,128], index: 7, kind: input, shape index: {}]   ;;  %s1057_s8 = inlined_call_operand.<no memory space> [shape: f32[1,1], index: 8, kind: input, shape index: {}]   ;;  %s1058_s9 = inlined_call_operand.hbm [shape: f32[1,32], index: 9, kind: output, shape index: {}]  }
   0x1   :  { %v14_v0 = vstv %s1057_s8 }
   0x2   :  { %15 = vst [vmem:[#allocation2] sm:$0x1] %v14_v0 }
   0x3   :  { %16 = vsyncpa [#allocation4], 0 }
   0x4   :  { %17 = vsyncpa [#allocation5], 0  ;;  %s903_s11 = smov [#allocation3]   ;;  %s855_s15 = scalar_lea.hbm %s1053_s4, 3072 }
   0x5   :  { %s31_s12 = sshll.u32 %s903_s11, 4  ;;  %p856_p0 = scmp.ne.s32.totalorder %s1053_s4, %s855_s15  ;;  %s32_s12 = int_to_ptr.vmem [resolvable:$true] %s31_s12 }
   0x6   :  { %p859_p1 = scmp.lt.u32.totalorder %s855_s15, %s1053_s4 }
   0x8   :  { %p861_p2 = pnand %p859_p1, %p856_p0 }
   0xa   :  { %864 = shalt.err (!%p861_p2)
}
   0xb   :  { %s865_s8 = scalar_lea.vmem %s32_s12, 3072  ;;  %p870_p4 = scmp.lt.s32.totalorder %s32_s12, %s32_s12 }
   0xc   :  { %p866_p3 = scmp.ne.s32.totalorder %s32_s12, %s865_s8  ;;  %p871_p5 = scmp.lt.s32.totalorder %s865_s8, %s865_s8 }
   0xe   :  { %p872_p6 = por %p871_p5, %p870_p4 }
  0x10   :  { %p873_p7 = pnand %p872_p6, %p866_p3 }
  0x12   :  { %876 = shalt.err (!%p873_p7)
}
  0x13   :  { %s904_s20 = smov 192   ;;  %s905_s21 = smov 12  }
  0x14   :  { %37 = dma.hbm_to_vmem [thread:$0]  %s1053_s4, 3072, %s32_s12, [#allocation4], %s904_s20, %s904_s20, %s905_s21  }
  0x15   :  { %899 = dma.done.wait [#allocation4], 3072  }
  0x16   :  { %900 = vsyncadd [#allocation4], 4294964224  ;;  %v906_v1 = vmov 0   ;;  %vm97_vm0 = vcmask 1044480   ;;  %v50_v4 = vld [vmem:[%s1049_s0] sm:$0xff]  ;;  %v51_v5 = vld [vmem:[%s1049_s0 + $0x8] sm:$0xff]  ;;  %v62_v37 = vlaneseq }
  0x17   :  { %139 = vmatprep.mubr.bf16.mxu0 %v906_v1  ;;  %770 = vset.pattern.permute.xlu0 %v906_v1  ;;  %v771_v2 = vld [vmem:[%s1050_s1 + $0x4] ss:$12 sps:$4 sm:$0x1f]   ;;  %v773_v3 = vld [vmem:[%s1050_s1] ss:$12 sps:$4 sm:$0x1f]   ;;  %v54_v6 = vpack.c.bf16 %v51_v5, %v50_v4 }
  0x18   :  { %681 = vmatprep.subr.msk.bf16.mxu0 %vm97_vm0, %v771_v2  ;;  %vm90_vm1 = vcmask 80896   ;;  %v52_v7 = vld [vmem:[%s1049_s0 + $0x10] sm:$0xff]  ;;  %v99_v8 = vsel %vm97_vm0, %v773_v3, 0  ;;  %v53_v10 = vld [vmem:[%s1049_s0 + $0x18] sm:$0xff]  ;;  %v1000_v38 = vshrl.u32 %v62_v37, 7  ;;  %vm908_vm2 = vmmov 0  }
  0x19   :  { %v774_v9 = vld [vmem:[%s1050_s1 + $0x8] ss:$12 sps:$4 sm:$0x1f]   ;;  %108 = vmatpush1.bf16.msra.mxu0 %v99_v8  ;;  %730 = vmatprep.mubr.msk.bf16.mxu1 %vm90_vm1, %v54_v6  ;;  %v55_v12 = vpack.c.bf16 %v53_v10, %v52_v7  ;;  %v775_v14 = vld [vmem:[#allocation3] ss:$12 sps:$4 sm:$0xff]   ;;  %s909_s8 = smov [#allocation6]  }
  0x1a   :  { %762 = vmatprep.subr.msk.bf16.mxu1 %vm97_vm0, %v774_v9  ;;  %v105_v11 = vsel %vm97_vm0, %v774_v9, 0  ;;  %v777_v13 = vld [vmem:[#allocation3 + $0x4] ss:$12 sps:$4 sm:$0xff]   ;;  %v780_v15 = vld [vmem:[#allocation3 + $0x1c] ss:$12 sps:$4 sm:$0xff]   ;;  %v1003_v39 = vsub.s32 0, %v1000_v38 }
  0x1b   :  { %729 = vmatpush3.bf16.msra.mxu1 %v105_v11  ;;  %447 = vmatprep.subr.bf16.mxu0 %v777_v13  ;;  %v778_v16 = vld [vmem:[#allocation3 + $0x18] ss:$12 sps:$4 sm:$0xff]   ;;  %v783_v17 = vld [vmem:[#allocation3 + $0x34] ss:$12 sps:$4 sm:$0xff]   ;;  %v781_v19 = vld [vmem:[#allocation3 + $0x30] ss:$12 sps:$4 sm:$0xff]  }
  0x1c   :  { %682 = vmatmul.mubr.msk.bf16.vlgmr.msra.gmra.mrb[0].mxu0 %vm90_vm1, %v54_v6  ;;  %v784_v18 = vld [vmem:[#allocation3 + $0x8] ss:$12 sps:$4 sm:$0xff]   ;;  %v787_v20 = vld [vmem:[#allocation3 + $0x4c] ss:$12 sps:$4 sm:$0xff]   ;;  %v791_v23 = vld [vmem:[#allocation3 + $0x64] ss:$12 sps:$4 sm:$0xff]  }
  0x1d   :  { %149 = vmatprep.mubr.bf16.mxu0 %v906_v1  ;;  %448 = vmatpush1.bf16.msra.mxu0 %v775_v14  ;;  %v788_v21 = vld [vmem:[#allocation3 + $0x20] ss:$12 sps:$4 sm:$0xff]   ;;  %v785_v22 = vld [vmem:[#allocation3 + $0x48] ss:$12 sps:$4 sm:$0xff]   ;;  %v792_v24 = vld [vmem:[#allocation3 + $0x38] ss:$12 sps:$4 sm:$0xff]  }
  0x1e   :  { %731 = vmatmul.mubr.msk.bf16.vlgmr.msra.gmra.mrb[0].mxu1 %vm90_vm1, %v55_v12  ;;  %449 = vmatprep.subr.bf16.mxu0 %v780_v15  ;;  %v789_v25 = vld [vmem:[#allocation3 + $0x60] ss:$12 sps:$4 sm:$0xff]   ;;  %v795_v26 = vld [vmem:[#allocation3 + $0x7c] ss:$12 sps:$4 sm:$0xff]   ;;  %v793_v28 = vld [vmem:[#allocation3 + $0x78] ss:$12 sps:$4 sm:$0xff]  }
  0x1f   :  { %734 = vmatprep.subr.bf16.mxu1 %v784_v18  ;;  %v796_v27 = vld [vmem:[#allocation3 + $0x50] ss:$12 sps:$4 sm:$0xff]   ;;  %v799_v29 = vld [vmem:[#allocation3 + $0x94] ss:$12 sps:$4 sm:$0xff]   ;;  %v803_v33 = vld [vmem:[#allocation3 + $0xac] ss:$12 sps:$4 sm:$0xff]  }
  0x20   :  { %735 = vmatpush3.bf16.msra.mxu1 %v784_v18  ;;  %v800_v30 = vld [vmem:[#allocation3 + $0x68] ss:$12 sps:$4 sm:$0xff]   ;;  %v797_v31 = vld [vmem:[#allocation3 + $0x90] ss:$12 sps:$4 sm:$0xff]   ;;  %v804_v34 = vld [vmem:[#allocation3 + $0x80] ss:$12 sps:$4 sm:$0xff]  }
  0x21   :  { %450 = vmatpush1.bf16.msra.mxu0 %v778_v16  ;;  %736 = vmatprep.subr.bf16.mxu1 %v788_v21  ;;  %v801_v32 = vld [vmem:[#allocation3 + $0xa8] ss:$12 sps:$4 sm:$0xff]   ;;  %v805_v35 = vld [vmem:[#allocation3 + $0x98] ss:$12 sps:$4 sm:$0xff]   ;;  %v806_v36 = vld [vmem:[#allocation3 + $0xb0] ss:$12 sps:$4 sm:$0xff]  }
  0x22   :  { %451 = vmatprep.subr.bf16.mxu0 %v783_v17  ;;  %v60_v40 = vld [vmem:[%s1051_s2] sm:$0x7]  ;;  %v68_v41 = vsub.s32 1, %v1000_v38  ;;  %v72_v0 = vsub.s32 2, %v1000_v38  ;;  %s669_s20 = sshll.u32 %s909_s8, 4  ;;  %vm661_vm3 = vcmask 253952   ;;  %s670_s20 = int_to_ptr.vmem [resolvable:$true] %s669_s20 }
  0x23   :  { %v65_v42 = vrot.slane %v60_v40, %v1003_v39  ;;  %v686_v13 = vld [vmem:[%s1052_s3] ss:$0 sm:$0xff]  ;;  %s877_s21 = scalar_lea.vmem %s670_s20, 16  ;;  %s881_s22 = scalar_lea.vmem %s670_s20, 32 }
  0x24   :  { %683 = vmatmul.mubr.msk.bf16.gmra.mrb[4].mxu0 %vm90_vm1, %v55_v12  ;;  %737 = vmatpush3.bf16.msra.mxu1 %v788_v21  ;;  %v69_v44 = vrot.slane %v60_v40, %v68_v41  ;;  %v73_v8 = vrot.slane %v60_v40, %v72_v0  ;;  %p878_p8 = scmp.ne.s32.totalorder %s670_s20, %s877_s21  ;;  %p882_p9 = scmp.lt.s32.totalorder %s670_s20, %s670_s20 }
  0x25   :  { %479 = vmatprep.mubr.bf16.mxu0 %v906_v1  ;;  %452 = vmatpush1.bf16.msra.mxu0 %v781_v19  ;;  %p883_p10 = scmp.lt.s32.totalorder %s881_s22, %s877_s21 }
  0x26   :  { %453 = vmatprep.subr.bf16.mxu0 %v787_v20  ;;  %738 = vmatprep.subr.bf16.mxu1 %v792_v24 }
  0x27   :  { %p884_p11 = por %p883_p10, %p882_p9 }
  0x28   :  { %739 = vmatpush3.bf16.msra.mxu1 %v792_v24 }
  0x29   :  { %454 = vmatpush1.bf16.msra.mxu0 %v785_v22  ;;  %740 = vmatprep.subr.bf16.mxu1 %v796_v27  ;;  %p885_p12 = pnand %p884_p11, %p878_p8 }
  0x2a   :  { %455 = vmatprep.subr.bf16.mxu0 %v791_v23 }
  0x2c   :  { %741 = vmatpush3.bf16.msra.mxu1 %v796_v27 }
  0x2d   :  { %456 = vmatpush1.bf16.msra.mxu0 %v789_v25  ;;  %742 = vmatprep.subr.bf16.mxu1 %v800_v30 }
  0x2e   :  { %457 = vmatprep.subr.bf16.mxu0 %v795_v26 }
  0x30   :  { %743 = vmatpush3.bf16.msra.mxu1 %v800_v30 }
  0x31   :  { %458 = vmatpush1.bf16.msra.mxu0 %v793_v28  ;;  %744 = vmatprep.subr.bf16.mxu1 %v804_v34 }
  0x32   :  { %459 = vmatprep.subr.bf16.mxu0 %v799_v29 }
  0x34   :  { %745 = vmatpush3.bf16.msra.mxu1 %v804_v34 }
  0x35   :  { %460 = vmatpush1.bf16.msra.mxu0 %v797_v31  ;;  %746 = vmatprep.subr.bf16.mxu1 %v805_v35 }
  0x36   :  { %461 = vmatprep.subr.bf16.mxu0 %v803_v33 }
  0x38   :  { %747 = vmatpush3.bf16.msra.mxu1 %v805_v35 }
  0x39   :  { %462 = vmatpush1.bf16.msra.mxu0 %v801_v32  ;;  %748 = vmatprep.subr.bf16.mxu1 %v806_v36 }
  0x3c   :  { %749 = vmatpush3.bf16.msra.mxu1 %v806_v36 }
  0xef   :  { %v141_v43 = vpop.f32.mrb[0].mxu0 }
  0xf0   :  { %v142_v45 = vadd.f32 %v141_v43, %v65_v42  ;;  %v143_v46 = vpop.f32.mrb[1].mxu0 }
  0xf1   :  { %v145_v47 = vpop.f32.mrb[2].mxu0  ;;  %v732_v48 = vpop.f32.mrb[0].mxu1  ;;  %v144_v53 = vadd.f32 %v143_v46, %v69_v44 }
  0xf2   :  { %v209_v49 = vmul.f32 0.5, %v142_v45  ;;  %v146_v50 = vadd.f32 %v145_v47, %v65_v42  ;;  %v147_v51 = vpop.f32.mrb[3].mxu0  ;;  %v194_v52 = vpop.f32.mrb[1].mxu1  ;;  %v203_v34 = vadd.f32 %v732_v48, %v73_v8 }
  0xf3   :  { %v733_v54 = vpop.f32.mrb[2].mxu1  ;;  %v148_v57 = vadd.f32 %v147_v51, %v69_v44  ;;  %v225_v58 = vmul.f32 0.5, %v144_v53  ;;  %v195_v17 = vadd.f32 %v194_v52, %v73_v8 }
  0xf4   :  { %807 = vtanh.f32 %v209_v49  ;;  %v210_v55 = vmul.f32 0.5, %v146_v50  ;;  %v197_v56 = vpop.f32.mrb[3].mxu1 }
  0xf5   :  { %v226_v62 = vmul.f32 0.5, %v148_v57  ;;  %v198_v22 = vadd.f32 %v197_v56, %v73_v8 }
  0xf6   :  { %809 = vtanh.f32 %v210_v55 }
  0xf7   :  { %v151_v59 = vpop.f32.mrb[4].mxu0  ;;  %811 = vtanh.f32 %v225_v58 }
  0xf8   :  { %v152_v60 = vadd.f32 %v151_v59, %v65_v42  ;;  %v153_v61 = vpop.f32.mrb[5].mxu0 }
  0xf9   :  { %v155_v63 = vpop.f32.mrb[6].mxu0  ;;  %v154_v5 = vadd.f32 %v153_v61, %v69_v44 }
  0xfa   :  { %v211_v2 = vmul.f32 0.5, %v152_v60  ;;  %v156_v3 = vadd.f32 %v155_v63, %v65_v42  ;;  %v157_v4 = vpop.f32.mrb[7].mxu0  ;;  %v206_v42 = vadd.f32 %v733_v54, %v73_v8 }
  0xfb   :  { %v158_v7 = vadd.f32 %v157_v4, %v69_v44  ;;  %v227_v11 = vmul.f32 0.5, %v154_v5  ;;  %v611_v4 = vld [vmem:[#allocation2] sm:$0x1] }
  0xfc   :  { %813 = vtanh.f32 %v211_v2  ;;  %v212_v6 = vmul.f32 0.5, %v156_v3  ;;  %v907_v3 = vmov 0.0   ;;  %614 = vperm.xlu0 %770, %v611_v4   ;;  %v302_v5 = vld [vmem:[%s1054_s5] sm:$0x7] }
  0xfd   :  { %815 = vtanh.f32 %v226_v62  ;;  %v228_v16 = vmul.f32 0.5, %v158_v7  ;;  %754 = vmatprep.subr.bf16.mxu0 %v907_v3  ;;  %v311_v7 = vrot.slane %v302_v5, %v68_v41 }
  0xfe   :  { %v808_v9 = vpop.eup %807  ;;  %817 = vtanh.f32 %v212_v6 }
  0xff   :  { %v217_v10 = vmul.f32 0.5, %v808_v9  ;;  %819 = vtanh.f32 %v227_v11 }
 0x100   :  { %v810_v12 = vpop.eup %809  ;;  %821 = vtanh.f32 %v228_v16 }
 0x101   :  { %v221_v14 = vadd.f32 0.5, %v217_v10  ;;  %v218_v15 = vmul.f32 0.5, %v810_v12  ;;  %v812_v20 = vpop.eup %811 }
 0x102   :  { %v233_v29 = vmul.f32 0.5, %v812_v20 }
 0x103   :  { %v222_v18 = vadd.f32 0.5, %v218_v15  ;;  %v248_v19 = vmul.f32 %v686_v13, %v221_v14 }
 0x104   :  { %v237_v36 = vadd.f32 0.5, %v233_v29 }
 0x105   :  { %v252_v21 = vadd.f32 %v248_v19, %v195_v17  ;;  %v249_v23 = vmul.f32 %v686_v13, %v222_v18 }
 0x106   :  { %v814_v24 = vpop.eup %813  ;;  %v260_v47 = vsub.f32 1.0, %v237_v36 }
 0x107   :  { %v816_v25 = vpop.eup %815  ;;  %v219_v26 = vmul.f32 0.5, %v814_v24  ;;  %823 = vtanh.f32 %v252_v21  ;;  %v253_v27 = vadd.f32 %v249_v23, %v198_v22 }
 0x108   :  { %v818_v28 = vpop.eup %817  ;;  %v234_v32 = vmul.f32 0.5, %v816_v25 }
 0x109   :  { %v223_v30 = vadd.f32 0.5, %v219_v26  ;;  %v220_v31 = vmul.f32 0.5, %v818_v28  ;;  %825 = vtanh.f32 %v253_v27  ;;  %v820_v37 = vpop.eup %819 }
 0x10a   :  { %v238_v44 = vadd.f32 0.5, %v234_v32  ;;  %v822_v45 = vpop.eup %821  ;;  %v235_v49 = vmul.f32 0.5, %v820_v37  ;;  %v711_v37 = vld [vmem:[%s1055_s6] ss:$0 sm:$0xff] }
 0x10b   :  { %v224_v33 = vadd.f32 0.5, %v220_v31  ;;  %v250_v35 = vmul.f32 %v686_v13, %v223_v30  ;;  %v236_v52 = vmul.f32 0.5, %v822_v45 }
 0x10c   :  { %v261_v51 = vsub.f32 1.0, %v238_v44  ;;  %v239_v56 = vadd.f32 0.5, %v235_v49 }
 0x10d   :  { %v254_v40 = vadd.f32 %v250_v35, %v203_v34  ;;  %v251_v43 = vmul.f32 %v686_v13, %v224_v33  ;;  %v240_v57 = vadd.f32 0.5, %v236_v52  ;;  %v315_v34 = vrot.slane %v302_v5, %v72_v0 }
 0x10e   :  { %v262_v59 = vsub.f32 1.0, %v239_v56 }
 0x10f   :  { %827 = vtanh.f32 %v254_v40  ;;  %v255_v46 = vadd.f32 %v251_v43, %v206_v42  ;;  %v263_v60 = vsub.f32 1.0, %v240_v57 }
 0x111   :  { %v824_v50 = vpop.eup %823  ;;  %829 = vtanh.f32 %v255_v46 }
 0x112   :  { %v264_v53 = vmul.f32 %v824_v50, %v260_v47 }
 0x113   :  { %v826_v55 = vpop.eup %825 }
 0x114   :  { %v265_v48 = vmul.f32 %v826_v55, %v261_v51 }
 0x116   :  { %v268_v58 = vpack.c.bf16 %v265_v48, %v264_v53 }
 0x118   :  { %480 = vmatmul.mubr.bf16.vlgmr.msra.gmra.mrb[8].mxu0 %v268_v58  ;;  %750 = vmatprep.mubr.bf16.mxu1 %v268_v58 }
 0x119   :  { %v828_v54 = vpop.eup %827  ;;  %489 = vmatprep.mubr.bf16.mxu0 %v906_v1  ;;  %v307_v1 = vrot.slane %v302_v5, %v1003_v39 }
 0x11a   :  { %v266_v61 = vmul.f32 %v828_v54, %v262_v59 }
 0x11b   :  { %v830_v62 = vpop.eup %829 }
 0x11c   :  { %v267_v63 = vmul.f32 %v830_v62, %v263_v60 }
 0x11e   :  { %v269_v2 = vpack.c.bf16 %v267_v63, %v266_v61 }
 0x120   :  { %490 = vmatmul.mubr.bf16.gmra.mrb[12].mxu0 %v269_v2  ;;  %751 = vmatmul.mubr.bf16.vlgmr.msra.gmra.mrb[4].mxu1 %v269_v2 }
 0x121   :  { %758 = vmatprep.mubr.msk.bf16.mxu0 %vm908_vm2, %v907_v3 }
 0x1eb   :  { %v481_v6 = vpop.f32.mrb[8].mxu0 }
 0x1ec   :  { %v482_v8 = vadd.f32 %v481_v6, %v307_v1  ;;  %v483_v9 = vpop.f32.mrb[9].mxu0 }
 0x1ed   :  { %v485_v10 = vpop.f32.mrb[10].mxu0  ;;  %v484_v14 = vadd.f32 %v483_v9, %v311_v7 }
 0x1ee   :  { %v549_v11 = vmul.f32 0.5, %v482_v8  ;;  %v486_v12 = vadd.f32 %v485_v10, %v307_v1  ;;  %v487_v13 = vpop.f32.mrb[11].mxu0 }
 0x1ef   :  { %v488_v16 = vadd.f32 %v487_v13, %v311_v7  ;;  %v565_v17 = vmul.f32 0.5, %v484_v14 }
 0x1f0   :  { %831 = vtanh.f32 %v549_v11  ;;  %v550_v15 = vmul.f32 0.5, %v486_v12 }
 0x1f1   :  { %v566_v23 = vmul.f32 0.5, %v488_v16 }
 0x1f2   :  { %833 = vtanh.f32 %v550_v15 }
 0x1f3   :  { %v491_v18 = vpop.f32.mrb[12].mxu0  ;;  %v752_v19 = vpop.f32.mrb[4].mxu1  ;;  %835 = vtanh.f32 %v565_v17 }
 0x1f4   :  { %v492_v20 = vadd.f32 %v491_v18, %v307_v1  ;;  %v493_v21 = vpop.f32.mrb[13].mxu0  ;;  %v534_v22 = vpop.f32.mrb[5].mxu1  ;;  %v543_v59 = vadd.f32 %v752_v19, %v315_v34 }
 0x1f5   :  { %v495_v24 = vpop.f32.mrb[14].mxu0  ;;  %v753_v41 = vpop.f32.mrb[6].mxu1  ;;  %v494_v29 = vadd.f32 %v493_v21, %v311_v7  ;;  %v535_v45 = vadd.f32 %v534_v22, %v315_v34 }
 0x1f6   :  { %v551_v25 = vmul.f32 0.5, %v492_v20  ;;  %v496_v26 = vadd.f32 %v495_v24, %v307_v1  ;;  %v497_v27 = vpop.f32.mrb[15].mxu0  ;;  %v537_v28 = vpop.f32.mrb[7].mxu1  ;;  %v546_v2 = vadd.f32 %v753_v41, %v315_v34  ;;  %v608_v41 = vld [vmem:[%s1056_s7] sm:$0x1] }
 0x1f7   :  { %v498_v31 = vadd.f32 %v497_v27, %v311_v7  ;;  %v567_v35 = vmul.f32 0.5, %v494_v29  ;;  %v538_v50 = vadd.f32 %v537_v28, %v315_v34 }
 0x1f8   :  { %837 = vtanh.f32 %v551_v25  ;;  %v552_v30 = vmul.f32 0.5, %v496_v26  ;;  %v615_v25 = vpop.permute.xlu0 %614 }
 0x1f9   :  { %839 = vtanh.f32 %v566_v23  ;;  %v568_v43 = vmul.f32 0.5, %v498_v31  ;;  %v620_v26 = vrot.slane %v615_v25, %v1003_v39 }
 0x1fa   :  { %v832_v32 = vpop.eup %831  ;;  %841 = vtanh.f32 %v552_v30 }
 0x1fb   :  { %v557_v33 = vmul.f32 0.5, %v832_v32  ;;  %843 = vtanh.f32 %v567_v35 }
 0x1fc   :  { %v834_v36 = vpop.eup %833  ;;  %845 = vtanh.f32 %v568_v43 }
 0x1fd   :  { %v561_v40 = vadd.f32 0.5, %v557_v33  ;;  %v558_v42 = vmul.f32 0.5, %v834_v36  ;;  %v836_v47 = vpop.eup %835 }
 0x1fe   :  { %v573_v56 = vmul.f32 0.5, %v836_v47 }
 0x1ff   :  { %v562_v44 = vadd.f32 0.5, %v558_v42  ;;  %v588_v46 = vmul.f32 %v711_v37, %v561_v40 }
 0x200   :  { %v577_v61 = vadd.f32 0.5, %v573_v56 }
 0x201   :  { %v592_v49 = vadd.f32 %v588_v46, %v535_v45  ;;  %v589_v51 = vmul.f32 %v711_v37, %v562_v44 }
 0x202   :  { %v838_v38 = vpop.eup %837  ;;  %v600_v7 = vsub.f32 1.0, %v577_v61 }
 0x203   :  { %v840_v0 = vpop.eup %839  ;;  %v559_v52 = vmul.f32 0.5, %v838_v38  ;;  %847 = vtanh.f32 %v592_v49  ;;  %v593_v53 = vadd.f32 %v589_v51, %v538_v50 }
 0x204   :  { %v842_v55 = vpop.eup %841  ;;  %v574_v58 = vmul.f32 0.5, %v840_v0 }
 0x205   :  { %v563_v48 = vadd.f32 0.5, %v559_v52  ;;  %v560_v57 = vmul.f32 0.5, %v842_v55  ;;  %849 = vtanh.f32 %v593_v53  ;;  %v844_v62 = vpop.eup %843 }
 0x206   :  { %v578_v5 = vadd.f32 0.5, %v574_v58  ;;  %v846_v1 = vpop.eup %845  ;;  %v575_v8 = vmul.f32 0.5, %v844_v62 }
 0x207   :  { %v590_v54 = vmul.f32 %v711_v37, %v563_v48  ;;  %v564_v60 = vadd.f32 0.5, %v560_v57  ;;  %v576_v11 = vmul.f32 0.5, %v846_v1 }
 0x208   :  { %v601_v10 = vsub.f32 1.0, %v578_v5  ;;  %v579_v14 = vadd.f32 0.5, %v575_v8 }
 0x209   :  { %v594_v63 = vadd.f32 %v590_v54, %v543_v59  ;;  %v591_v4 = vmul.f32 %v711_v37, %v564_v60  ;;  %v580_v16 = vadd.f32 0.5, %v576_v11 }
 0x20a   :  { %v602_v18 = vsub.f32 1.0, %v579_v14 }
 0x20b   :  { %851 = vtanh.f32 %v594_v63  ;;  %v595_v6 = vadd.f32 %v591_v4, %v546_v2  ;;  %v603_v21 = vsub.f32 1.0, %v580_v16 }
 0x20d   :  { %v848_v9 = vpop.eup %847  ;;  %853 = vtanh.f32 %v595_v6 }
 0x20e   :  { %v604_v12 = vmul.f32 %v848_v9, %v600_v7 }
 0x20f   :  { %v850_v13 = vpop.eup %849 }
 0x210   :  { %v605_v15 = vmul.f32 %v850_v13, %v601_v10 }
 0x212   :  { %v609_v17 = vpack.c.bf16 %v605_v15, %v604_v12 }
 0x214   :  { %755 = vmatpush3.bf16.xpose.msra.mxu0 %v609_v17 }
 0x215   :  { %v852_v19 = vpop.eup %851  ;;  %756 = vmatprep.subr.bf16.mxu0 %v907_v3 }
 0x216   :  { %v606_v20 = vmul.f32 %v852_v19, %v602_v18 }
 0x217   :  { %v854_v22 = vpop.eup %853 }
 0x218   :  { %v607_v23 = vmul.f32 %v854_v22, %v603_v21 }
 0x21a   :  { %v610_v24 = vpack.c.bf16 %v607_v23, %v606_v20 }
 0x21c   :  { %757 = vmatpush3.bf16.xpose.msra.mxu0 %v610_v24 }
 0x223   :  { %759 = vmatmul.mubr.bf16.vlgmr.msra.gmra.mrb[16].mxu0 %v608_v41 }
 0x2f6   :  { %v655_v27 = vpop.f32.mrb[16].mxu0 }
 0x2f7   :  { %v656_v28 = vadd.f32 %v655_v27, %v620_v26  ;;  %v760_v3 = vpop.f32.mrb[17].mxu0 }
 0x2f8   :  { %v658_v29 = vpop.f32.mrb[18].mxu0 }
 0x2f9   :  { %v761_v30 = vpop.f32.mrb[19].mxu0  ;;  %662 = vst.msk [vmem:[#allocation6] sm:$0x1] %vm661_vm3, %v656_v28 }
 0x2fa   :  { %888 = shalt.err (!%p885_p12)
}
 0x2fb   :  { %s889_s24 = scalar_lea.hbm %s1058_s9, 16 }
 0x2fc   :  { %p890_p13 = scmp.ne.s32.totalorder %s1058_s9, %s889_s24  ;;  %p893_p0 = scmp.lt.u32.totalorder %s889_s24, %s1058_s9 }
 0x2fe   :  { %p895_p1 = pnand %p893_p0, %p890_p13 }
 0x300   :  { %898 = shalt.err (!%p895_p1)
}
 0x301   :  { %672 = dma.vmem_to_hbm [thread:$0]  %s670_s20, 16, %s1058_s9, [#allocation5]  }
 0x302   :  { %901 = dma.done.wait [#allocation5], 16  }
 0x303   :  { %902 = vsyncadd [#allocation5], 4294967280 }
 0x304   :  { %676 = vsyncpa [#allocation4], 1 }
 0x305   :  { %677 = vsyncpa [#allocation5], 1 }

</bundles_post_ra>
